<compile_context>
chip_gen: v5e
topology: v5e:2x2
jax: 0.10.0
libtpu: 0.0.40
codegen_flags: <defaults>
</compile_context>

<pallas_src>
import functools

import jax
import jax.numpy as jnp
from jax.experimental import pallas as pl
from jax.experimental.pallas import tpu as pltpu


def _round_up(x, m):
    return ((x + m - 1) // m) * m


def _myloss_kernel(x_ref, t_ref, acc_ref, *, hw, need_mask):
    """x_ref: (C, T) logits (native dtype); t_ref: (1, T) int32 labels.

    acc_ref: (4, T) f32 output block, resident across the pixel-tile axis:
      row 0: per-lane sum(argmax * target)   (dice intersection)
      row 1: per-lane sum(target)
      row 2: per-lane sum(argmax)
      row 3: per-lane sum(focal per-pixel loss)
    """
    i = pl.program_id(1)

    @pl.when(i == 0)
    def _():
        acc_ref[...] = jnp.zeros_like(acc_ref)

    x = x_ref[...].astype(jnp.float32)          # (C, T), pixels on lanes
    t = t_ref[...]                              # (1, T) int32
    C, T = x.shape

    row = jax.lax.broadcasted_iota(jnp.int32, (C, T), 0)   # class id per row

    # Per-pixel argmax over the class (sublane) axis — first max index,
    # matching torch/jnp argmax tie-breaking.
    xmax = jnp.max(x, axis=0, keepdims=True)                            # (1, T)
    am = jnp.min(jnp.where(x == xmax, row, C), axis=0, keepdims=True)   # (1, T)
    af = am.astype(jnp.float32)
    tf = t.astype(jnp.float32)

    # Focal loss: log_softmax gather at target; one exp over classes, the
    # (1, T) exp/log for p and log_p go to the EUP slot.
    z = x - xmax                                                        # (C, T)
    sum_ez = jnp.sum(jnp.exp(z), axis=0, keepdims=True)                 # (1, T)
    z_t = jnp.sum(jnp.where(row == t, z, 0.0), axis=0, keepdims=True)   # (1, T)
    log_p = z_t - jnp.log(sum_ez)                                       # (1, T)
    p = jnp.exp(log_p)                                                  # (1, T)
    alpha = jnp.where(t == 1, 0.2, 0.8).astype(jnp.float32)             # (1, T)
    omp = 1.0 - p
    focal = -alpha * omp * omp * log_p                                  # (1, T)

    if need_mask:
        # The final tile may extend past the image; Pallas leaves the padded
        # region of the block unspecified, so zero every contribution from
        # invalid lanes.
        lane = jax.lax.broadcasted_iota(jnp.int32, (1, T), 1)
        valid = (i * T + lane) < hw                                     # (1, T)
        zero = jnp.zeros_like(af)
        af = jnp.where(valid, af, zero)
        tf = jnp.where(valid, tf, zero)
        focal = jnp.where(valid, focal, zero)

    # Single full-block accumulate (per-lane partials only; the cross-lane
    # reduce is deferred to JAX on the tiny result).
    acc_ref[...] += jnp.concatenate([af * tf, tf, af, focal], axis=0)


def myloss_forward(preds, labels, *, tile_hw=None):
    """preds: [B, C, H, W] float logits, labels: [B, H, W] int. Scalar loss."""
    B, C, H, W = preds.shape
    HW = H * W

    # Lane-dense pixel tile: large enough to amortize per-step grid overhead,
    # small enough that the pipelined blocks stay well inside VMEM
    # (per pixel: 2*C buffered logits + 2 buffered labels + 4 resident acc).
    if tile_hw is None:
        budget = 8 * 1024 * 1024
        bytes_per_pixel = (2 * C + 2 + 4) * 4
        tile_hw = min(65536, budget // bytes_per_pixel)
    tile = max(128, min(tile_hw, HW))
    tile = _round_up(tile, 128)
    n_tiles = pl.cdiv(HW, tile)
    need_mask = (n_tiles * tile) != HW

    # Free contiguous views of the NCHW input — no transpose, no pad copy,
    # no f32 upcast in HBM.
    x = preds.reshape(B, C, HW)
    t = labels.reshape(B, 1, HW).astype(jnp.int32)

    kernel = functools.partial(_myloss_kernel, hw=HW, need_mask=need_mask)

    acc = pl.pallas_call(
        kernel,
        out_shape=jax.ShapeDtypeStruct((B, 4, tile), jnp.float32),
        grid_spec=pltpu.PrefetchScalarGridSpec(
            num_scalar_prefetch=0,
            grid=(B, n_tiles),
            in_specs=[
                pl.BlockSpec((None, C, tile), lambda b, i: (b, 0, i)),
                pl.BlockSpec((None, 1, tile), lambda b, i: (b, 0, i)),
            ],
            out_specs=pl.BlockSpec((None, 4, tile), lambda b, i: (b, 0, 0)),
        ),
        compiler_params=pltpu.CompilerParams(
            dimension_semantics=("parallel", "arbitrary"),
        ),
    )(x, t)

    # Final (tiny) cross-lane / cross-image reduction in plain JAX.
    sums = jnp.sum(acc, axis=(0, 2))            # (4,)
    inter, sum_t, sum_p, focal_sum = sums[0], sums[1], sums[2], sums[3]

    smooth = 1e-5
    dice = (2.0 * inter + smooth) / (sum_t + sum_p + smooth)
    dice_loss = 1.0 - dice                      # class loop is index-independent
    focal_loss = focal_sum / (B * HW)
    return dice_loss + focal_loss


def _myloss_reference(preds, labels):
    """Pure-JAX reference mirroring the PyTorch forward."""
    B, C, H, W = preds.shape
    # Dice
    am = jnp.argmax(preds, axis=1)              # softmax is monotone along dim 1
    amf = am.reshape(B, -1).astype(jnp.float32)
    tf = labels.reshape(B, -1).astype(jnp.float32)
    smooth = 1e-5
    inter = jnp.sum(amf * tf)
    dice = (2.0 * inter + smooth) / (jnp.sum(tf) + jnp.sum(amf) + smooth)
    dice_loss = 1.0 - dice
    # Focal
    logits = jnp.transpose(preds, (0, 2, 3, 1)).reshape(-1, C).astype(jnp.float32)
    tgt = labels.reshape(-1)
    log_sm = jax.nn.log_softmax(logits, axis=-1)
    log_p = jnp.take_along_axis(log_sm, tgt[:, None], axis=1)[:, 0]
    p = jnp.exp(log_p)
    alpha = jnp.where(tgt == 1, 0.2, 0.8).astype(jnp.float32)
    focal = jnp.sum(-alpha * (1.0 - p) ** 2 * log_p) / tgt.shape[0]
    return dice_loss + focal


if __name__ == "__main__":
    key = jax.random.PRNGKey(0)
    kp, kl = jax.random.split(key)
    B, C, H, W = 2, 4, 16, 16
    preds = jax.random.normal(kp, (B, C, H, W), dtype=jnp.float32)
    labels = jax.random.randint(kl, (B, H, W), 0, C, dtype=jnp.int32)

    loss = jax.block_until_ready(myloss_forward(preds, labels))
    ref = jax.block_until_ready(_myloss_reference(preds, labels))
    assert jnp.allclose(loss, ref, atol=1e-4, rtol=1e-4), (loss, ref)

    print("KERNEL_OK")
</pallas_src>

<mosaic_0001>
module attributes {stable_mosaic.version = 11 : i64} {
  func.func @_myloss_kernel(%arg0: i32, %arg1: i32, %arg2: memref<1x4x256xf32, #tpu.memory_space<vmem>>, %arg3: memref<1x1x256xi32, #tpu.memory_space<vmem>>, %arg4: memref<1x4x256xf32, #tpu.memory_space<vmem>>) attributes {dimension_semantics = [#tpu.dimension_semantics<parallel>, #tpu.dimension_semantics<arbitrary>], iteration_bounds = array<i64: 2, 1>, scalar_prefetch = 0 : i64, scratch_operands = 0 : i64, tpu.core_type = #tpu.core_type<tc>, window_params = [{transform_indices = @transform_0, window_bounds = array<i64: 1, 4, 256>}, {transform_indices = @transform_1, window_bounds = array<i64: 1, 1, 256>}, {transform_indices = @transform_2, window_bounds = array<i64: 1, 4, 256>}]} {
    %c0_i32 = arith.constant 0 : i32
    %0 = arith.cmpi eq, %arg1, %c0_i32 : i32
    %1 = arith.extui %0 : i1 to i32
    %c0_i32_0 = arith.constant 0 : i32
    %2 = arith.cmpi ne, %1, %c0_i32_0 : i32
    scf.if %2 {
      %cst_20 = arith.constant 0.000000e+00 : f32
      %52 = vector.broadcast %cst_20 : f32 to vector<4x256xf32>
      %c0_21 = arith.constant 0 : index
      %c0_22 = arith.constant 0 : index
      %c0_23 = arith.constant 0 : index
      %53 = vector.load %arg4[%c0_21, %c0_22, %c0_23] : memref<1x4x256xf32, #tpu.memory_space<vmem>>, vector<1x4x256xf32>
      %54 = vector.shape_cast %53 : vector<1x4x256xf32> to vector<4x256xf32>
      %55 = vector.shape_cast %52 : vector<4x256xf32> to vector<1x4x256xf32>
      tpu.vector_store %arg4[%c0_21, %c0_22, %c0_23], %55 {strides = array<i32>} : memref<1x4x256xf32, #tpu.memory_space<vmem>>, vector<1x4x256xf32>,
    } else {
    }
    %c0 = arith.constant 0 : index
    %c0_1 = arith.constant 0 : index
    %c0_2 = arith.constant 0 : index
    %3 = vector.load %arg2[%c0, %c0_1, %c0_2] : memref<1x4x256xf32, #tpu.memory_space<vmem>>, vector<1x4x256xf32>
    %4 = vector.shape_cast %3 : vector<1x4x256xf32> to vector<4x256xf32>
    %c0_3 = arith.constant 0 : index
    %c0_4 = arith.constant 0 : index
    %c0_5 = arith.constant 0 : index
    %5 = vector.load %arg3[%c0_3, %c0_4, %c0_5] : memref<1x1x256xi32, #tpu.memory_space<vmem>>, vector<1x1x256xi32>
    %6 = vector.shape_cast %5 : vector<1x1x256xi32> to vector<1x256xi32>
    %7 = tpu.iota {dimensions = array<i32: 0>} : vector<4x256xi32>
    %cst = arith.constant dense<0xFF800000> : vector<256xf32>
    %8 = vector.multi_reduction <maximumf>, %4, %cst [0] : vector<4x256xf32> to vector<256xf32>
    %9 = vector.shape_cast %8 : vector<256xf32> to vector<1x256xf32>
    %10 = vector.broadcast %9 : vector<1x256xf32> to vector<4x256xf32>
    %11 = arith.cmpf oeq, %4, %10 : vector<4x256xf32>
    %c4_i32 = arith.constant 4 : i32
    %12 = vector.broadcast %c4_i32 : i32 to vector<4x256xi32>
    %13 = arith.select %11, %7, %12 : vector<4x256xi1>, vector<4x256xi32>
    %cst_6 = arith.constant dense<2147483647> : vector<256xi32>
    %14 = vector.multi_reduction <minsi>, %13, %cst_6 [0] : vector<4x256xi32> to vector<256xi32>
    %15 = vector.shape_cast %14 : vector<256xi32> to vector<1x256xi32>
    %16 = arith.sitofp %15 : vector<1x256xi32> to vector<1x256xf32>
    %17 = arith.sitofp %6 : vector<1x256xi32> to vector<1x256xf32>
    %18 = vector.broadcast %9 : vector<1x256xf32> to vector<4x256xf32>
    %19 = arith.subf %4, %18 : vector<4x256xf32>
    %20 = math.exp %19 : vector<4x256xf32>
    %cst_7 = arith.constant dense<0.000000e+00> : vector<256xf32>
    %21 = vector.multi_reduction <add>, %20, %cst_7 [0] : vector<4x256xf32> to vector<256xf32>
    %22 = vector.shape_cast %21 : vector<256xf32> to vector<1x256xf32>
    %23 = vector.broadcast %6 : vector<1x256xi32> to vector<4x256xi32>
    %24 = arith.cmpi eq, %7, %23 : vector<4x256xi32>
    %cst_8 = arith.constant 0.000000e+00 : f32
    %25 = vector.broadcast %cst_8 : f32 to vector<4x256xf32>
    %26 = arith.select %24, %19, %25 : vector<4x256xi1>, vector<4x256xf32>
    %cst_9 = arith.constant dense<0.000000e+00> : vector<256xf32>
    %27 = vector.multi_reduction <add>, %26, %cst_9 [0] : vector<4x256xf32> to vector<256xf32>
    %28 = vector.shape_cast %27 : vector<256xf32> to vector<1x256xf32>
    %29 = math.log %22 : vector<1x256xf32>
    %30 = arith.subf %28, %29 : vector<1x256xf32>
    %31 = math.exp %30 : vector<1x256xf32>
    %c1_i32 = arith.constant 1 : i32
    %32 = vector.broadcast %c1_i32 : i32 to vector<1x256xi32>
    %33 = arith.cmpi eq, %6, %32 : vector<1x256xi32>
    %cst_10 = arith.constant 2.000000e-01 : f32
    %cst_11 = arith.constant 8.000000e-01 : f32
    %34 = vector.broadcast %cst_10 : f32 to vector<1x256xf32>
    %35 = vector.broadcast %cst_11 : f32 to vector<1x256xf32>
    %36 = arith.select %33, %34, %35 : vector<1x256xi1>, vector<1x256xf32>
    %cst_12 = arith.constant 1.000000e+00 : f32
    %37 = vector.broadcast %cst_12 : f32 to vector<1x256xf32>
    %38 = arith.subf %37, %31 : vector<1x256xf32>
    %cst_13 = arith.constant 0.000000e+00 : f32
    %39 = vector.broadcast %cst_13 : f32 to vector<1x256xf32>
    %40 = arith.subf %39, %36 : vector<1x256xf32>
    %41 = arith.mulf %40, %38 : vector<1x256xf32>
    %42 = arith.mulf %41, %38 : vector<1x256xf32>
    %43 = arith.mulf %42, %30 : vector<1x256xf32>
    %c0_14 = arith.constant 0 : index
    %c0_15 = arith.constant 0 : index
    %c0_16 = arith.constant 0 : index
    %44 = vector.load %arg4[%c0_14, %c0_15, %c0_16] : memref<1x4x256xf32, #tpu.memory_space<vmem>>, vector<1x4x256xf32>
    %45 = vector.shape_cast %44 : vector<1x4x256xf32> to vector<4x256xf32>
    %46 = arith.mulf %16, %17 : vector<1x256xf32>
    %47 = tpu.concatenate %46, %17, %16, %43 in 0 : vector<1x256xf32>, vector<1x256xf32>, vector<1x256xf32>, vector<1x256xf32> -> vector<4x256xf32>
    %48 = arith.addf %45, %47 : vector<4x256xf32>
    %c0_17 = arith.constant 0 : index
    %c0_18 = arith.constant 0 : index
    %c0_19 = arith.constant 0 : index
    %49 = vector.load %arg4[%c0_17, %c0_18, %c0_19] : memref<1x4x256xf32, #tpu.memory_space<vmem>>, vector<1x4x256xf32>
    %50 = vector.shape_cast %49 : vector<1x4x256xf32> to vector<4x256xf32>
    %51 = vector.shape_cast %48 : vector<4x256xf32> to vector<1x4x256xf32>
    tpu.vector_store %arg4[%c0_17, %c0_18, %c0_19], %51 {strides = array<i32>} : memref<1x4x256xf32, #tpu.memory_space<vmem>>, vector<1x4x256xf32>,
    return
  }
  func.func @transform_0(%arg0: i32, %arg1: i32) -> (i32, i32, i32) {
    %c0_i32 = arith.constant 0 : i32
    %c0_i32_0 = arith.constant 0 : i32
    return %arg0, %c0_i32, %arg1 : i32, i32, i32
  }
  func.func @transform_1(%arg0: i32, %arg1: i32) -> (i32, i32, i32) {
    %c0_i32 = arith.constant 0 : i32
    %c0_i32_0 = arith.constant 0 : i32
    return %arg0, %c0_i32, %arg1 : i32, i32, i32
  }
  func.func @transform_2(%arg0: i32, %arg1: i32) -> (i32, i32, i32) {
    %c0_i32 = arith.constant 0 : i32
    %c0_i32_0 = arith.constant 0 : i32
    %c0_i32_1 = arith.constant 0 : i32
    return %arg0, %c0_i32, %c0_i32_0 : i32, i32, i32
  }
}

</mosaic_0001>

<bundles_post_ra>
// kernel: tpu_custom_call.1
= control target key start
LH: loop header
LB: loop body
LE: loop exit
PB: predicated region body
PF: predicated region fallthrough
CT: control target
= control target key end

     0   :  { %7 = vsyncpa [#allocation3], 0  ;;  %s949_s0 = inlined_call_operand.hbm [shape: f32[2,4,256], index: 0, kind: input, shape index: {}]   ;;  %s950_s1 = inlined_call_operand.hbm [shape: s32[2,1,256], index: 1, kind: input, shape index: {}]   ;;  %s951_s2 = inlined_call_operand.hbm [shape: f32[2,4,256], index: 2, kind: output, shape index: {}]  }
   0x1   :  { %9 = vsyncpa [#allocation3 + $0x1], 0 }
   0x2   :  { %10 = vsyncpa [#allocation6], 0 }
   0x3   :  { %12 = vsyncpa [#allocation6 + $0x1], 0 }
   0x4   :  { %13 = vsyncpa [#allocation4], 0 }
   0x5   :  { %15 = vsyncpa [#allocation4 + $0x1], 0  ;;  %s784_s9 = smov 0   ;;  %s786_s10 = smov 0  }
   0x6   :  { %s788_s11 = smov 0   ;;  %s790_s12 = smov 0  }
   0x7   :  { %s792_s13 = smov 0   ;;  %s794_s14 = smov 0  }
   0x8 LB: > { %s519_s15 = sadd.s32 4294967295, %s765_s14   ;;  %s520_s16 = sadd.s32 4294967294, %s765_s14   ;;  %s765_s14 = sphi %s794_s14, %s21_s14   ;;  %s761_s13 = sphi %s792_s13, %s961_s13   ;;  %s757_s12 = sphi %s790_s12, %s960_s12   ;;  %s753_s11 = sphi %s788_s11, %s959_s11   ;;  %s749_s10 = sphi %s786_s10, %s958_s10   ;;  %s745_s9 = sphi %s784_s9, %s957_s9  }
   0x9   : > { %s33_s17 = sadd.s32 1, %s761_s13  ;;  %s42_s18 = sadd.s32 1, %s753_s11 }
   0xa   : > { %p35_p0 = scmp.ge.s32.totalorder %s33_s17, 2  ;;  %p49_p1 = scmp.ne.s32.totalorder %s753_s11, %s749_s10 }
   0xb   : > { %p50_p2 = scmp.eq.s32.totalorder %s765_s14, 0  ;;  %p55_p3 = scmp.ne.s32.totalorder %s749_s10, %s745_s9 }
   0xc   : > { %s963_s17 = smov (%p35_p0, %s33_s17), 0  ;;  %p56_p5 = scmp.eq.s32.totalorder %s519_s15, 0 }
   0xd   : > { %p825_p4 = por %p50_p2, %p49_p1  ;;  %s37_s20 = ssub.s32 %s761_s13, %s963_s17 }
   0xe   : > { %p107_p6 = scmp.eq.s32.totalorder %s519_s15, 1  ;;  %p40_p7 = scmp.eq.s32.totalorder %s37_s20, 0 }
   0xf   : > { %p831_p8 = por %p56_p5, %p55_p3  ;;  %p113_p10 = scmp.eq.s32.totalorder %s520_s16, 1 }
  0x10   : > { %p835_p9 = por %p107_p6, %p49_p1  ;;  %p522_p12 = scmp.ge.s32.totalorder %s765_s14, 2 }
  0x11   : > { %s840_s23 = scalar_select %p40_p7, %s753_s11, %s42_s18  }
  0x12   : > { %p842_p11 = por %p113_p10, %p55_p3  ;;  %p556_p13 = scmp.lt.s32.totalorder %s765_s14, 2 }
  0x13   : > { %s133_s25 = sand.u32 1, %s753_s11   ;;  %s537_s27 = sshll.u32 %s761_s13, 3 }
  0x14   : > { %s523_s26 = sshll.u32 %s133_s25, 3  ;;  %s144_s30 = scalar_lea.hbm %s949_s0, %s537_s27 }
  0x15   : > { %s137_s3 = scalar_lea.vmem [#allocation2], %s523_s26  ;;  %s146_s5 = sshll.u32 %s144_s30, 4  ;;  %s147_s5 = int_to_ptr.hbm [resolvable:$true] %s146_s5 }
  0x16   : > { %s148_s4 = sshll.u32 %s137_s3, 4  ;;  %p855_p0 = pnand %p556_p13, %p825_p4  ;;  %s149_s4 = int_to_ptr.vmem [resolvable:$true] %s148_s4 }
  0x17   : > { %p528_p1 = scmp.ge.s32.totalorder %s765_s14, 1  ;;  %p174_p2 = scmp.lt.s32.totalorder %s765_s14, 3 }
  0x18   : > { %s134_s7 = scalar_lea.sflag [#allocation3], %s133_s25  ;;  %s526_s8 = sshll.u32 %s133_s25, 1 }
  0x19   : > { %548 = dma.hbm_to_vmem [thread:$0]  (!%p855_p0), %s147_s5, 128, %s149_s4, %s134_s7  }
  0x1a   : > { %p175_p3 = pnand %p528_p1, %p174_p2  ;;  %s527_s15 = sshll.u32 %s761_s13, 1 }
  0x1b   : > { %s165_s20 = scalar_lea.hbm %s950_s1, %s527_s15  ;;  %s159_s26 = scalar_lea.vmem [#allocation5], %s526_s8 }
  0x1c   : > { %s169_s19 = sshll.u32 %s159_s26, 4  ;;  %s167_s27 = sshll.u32 %s165_s20, 4  ;;  %s170_s19 = int_to_ptr.vmem [resolvable:$true] %s169_s19  ;;  %s168_s27 = int_to_ptr.hbm [resolvable:$true] %s167_s27 }
  0x1d   : > { %s156_s28 = scalar_lea.sflag [#allocation6], %s133_s25  ;;  %178 = sbr.rel (%p175_p3) target bundleno = 135 (0x87), region = 28 }
  0x1e   : > { %551 = dma.hbm_to_vmem [thread:$0]  (!%p855_p0), %s168_s27, 32, %s170_s19, %s156_s28  }
  0x1f   : > { %s870_s29 = sand.u32 (!%p175_p3), 1, %s749_s10  }
  0x20   : > { %s529_s30 = sshll.u32 (!%p175_p3), %s870_s29, 3  ;;  %s181_s3 = scalar_lea.sflag (!%p175_p3), [#allocation3], %s870_s29 }
  0x21   : > { %s184_s4 = scalar_lea.vmem (!%p175_p3), [#allocation2], %s529_s30 }
  0x22   : > { %732 = dma.done.wait (%p831_p8), %s181_s3, 128  }
  0x23   : > { %734 = vsyncadd (%p831_p8), %s181_s3, 4294967168  ;;  %s530_s25 = sshll.u32 %s870_s29, 1  ;;  %s191_s5 = scalar_lea.sflag [#allocation6], %s870_s29 }
  0x24   : > { %s882_s6 = scalar_lea.vmem [#allocation5], %s530_s25 }
  0x25   : > { %736 = dma.done.wait (%p831_p8), %s191_s5, 32  }
  0x26   : > { %738 = vsyncadd (%p831_p8), %s191_s5, 4294967264  ;;  %v228_v0 = vld [vmem:[%s184_s4] sm:$0xff]  ;;  %vm238_vm0 = vcmask 1043456   ;;  %v230_v9 = vlaneseq  ;;  %v767_v12 = vmov 839922192   ;;  %vm357_vm11 = vcmask 1040384  }
  0x27   : > { %233 = vst [vmem:[#allocation1] ss:$2 sm:$0xff] %v228_v0  ;;  %v260_v13 = vunpack.c.l.s4 %v767_v12  ;;  %v892_v31 = vld [vmem:[%s882_s6] sm:$0x3]  ;;  %s538_s21 = sshll.u32 %s757_s12, 3  ;;  %vm383_vm12 = vcmask 1041408  }
  0x28   : > { %v231_v16 = vshrl.u32 %v230_v9, 7  ;;  %v313_v34 = vperm.slane %v892_v31, 0  ;;  %v314_v37 = vperm.slane %v892_v31, 1  ;;  %vm349_vm9 = vcmp.eq.s32.totalorder %v892_v31, 1  ;;  %s408_s15 = scalar_lea.hbm %s951_s2, %s538_s21  ;;  %s220_s12 = scalar_lea.vmem [#allocation7], %s529_s30 }
  0x29   : > { %v261_v19 = vunpack.c.0.s8 %v260_v13  ;;  %vm386_vm13 = vcmask 1042432   ;;  %s410_s16 = sshll.u32 %s220_s12, 4  ;;  %s412_s18 = sshll.u32 %s408_s15, 4  ;;  %s411_s16 = int_to_ptr.vmem [resolvable:$true] %s410_s16  ;;  %s413_s18 = int_to_ptr.hbm [resolvable:$true] %s412_s18 }
  0x2a   : > { %vm315_vm2 = vcmp.eq.s32.totalorder %v231_v16, %v313_v34  ;;  %vm316_vm3 = vcmp.eq.s32.totalorder %v231_v16, %v314_v37  ;;  %s397_s20 = scalar_lea.sflag [#allocation4], %s870_s29  ;;  %s693_s26 = sshra.s32 %s413_s18, 4  ;;  %s694_s26 = int_to_ptr.hbm [resolvable:$true] %s693_s26 }
  0x2b   : > { %v262_v23 = vperm.slane %v231_v16, %v261_v19  ;;  %s695_s19 = scalar_lea.hbm %s694_s26, 8  ;;  %s699_s30 = scalar_lea.hbm %s951_s2, 16 }
  0x2c   : > { %p696_p4 = scmp.ne.s32.totalorder %s694_s26, %s695_s19  ;;  %p700_p7 = scmp.lt.s32.totalorder %s694_s26, %s951_s2 }
  0x2d   : > { %p701_p8 = scmp.lt.s32.totalorder %s699_s30, %s695_s19 }
  0x2e   : > { %v234_v1 = vld.sshfl [vmem:[#allocation1] sm:$0xff pattern:$0x75316420]  ;;  %v235_v2 = vld.sshfl [vmem:[#allocation1 + $0x8] sm:$0xff pattern:$0x75316420]  ;;  %p697_p5 = pnand %p696_p4, %p835_p9 }
  0x2f   : > { %v239_v3 = vsel %vm238_vm0, %v234_v1, -inf  ;;  %v246_v4 = vsel %vm238_vm0, %v235_v2, -inf  ;;  %p702_p10 = por %p701_p8, %p700_p7 }
  0x30   : > { %v240_v5 = vrot.slane %v239_v3, 4  ;;  %v247_v6 = vrot.slane %v246_v4, 4  ;;  %p698_p6 = pneg %p697_p5 }
  0x32   : > { %v241_v7 = vmax.f32 %v239_v3, %v240_v5  ;;  %v248_v8 = vmax.f32 %v246_v4, %v247_v6  ;;  %p703_p13 = pnand %p702_p10, %p698_p6 }
  0x34   : > { %v242_v10 = vrot.slane %v241_v7, 2  ;;  %v249_v11 = vrot.slane %v248_v8, 2 }
  0x36   : > { %v243_v14 = vmax.f32 %v241_v7, %v242_v10  ;;  %v250_v15 = vmax.f32 %v248_v8, %v249_v11 }
  0x38   : > { %v244_v17 = vrot.slane %v243_v14, 1  ;;  %v251_v18 = vrot.slane %v250_v15, 1 }
  0x3a   : > { %v252_v20 = vmax.f32 %v250_v15, %v251_v18  ;;  %v245_v21 = vmax.f32 %v243_v14, %v244_v17 }
  0x3c   : > { %v255_v22 = vrot.slane %v252_v20, 4 }
  0x3e   : > { %v256_v24 = vsel %vm238_vm0, %v245_v21, %v255_v22 }
  0x3f   : > { %vm258_vm1 = vcmp.eq.f32.partialorder %v228_v0, %v256_v24  ;;  %v290_v25 = vsub.f32 %v228_v0, %v256_v24  ;;  %v289_v24 = vcvt.s32.f32 %v892_v31 }
  0x40   : > { %v263_v26 = vsel %vm258_vm1, %v262_v23, 4 }
  0x41   : > { %v291_v27 = vmul.f32 1.442695, %v290_v25  ;;  %264 = vst [vmem:[#allocation1] ss:$2 sm:$0xff] %v263_v26  ;;  %v768_v26 = vmov 0.8  }
  0x43   : > { %609 = vpow2.f32 %v291_v27  ;;  %v350_v27 = vsel %vm349_vm9, 0.2, %v768_v26 }
  0x44   : > { %v353_v34 = vsub.f32 0.0, %v350_v27 }
  0x48   : > { %v265_v28 = vld.sshfl [vmem:[#allocation1] sm:$0xff pattern:$0x75316420]  ;;  %v266_v29 = vld.sshfl [vmem:[#allocation1 + $0x8] sm:$0xff pattern:$0x75316420] }
  0x49   : > { %v610_v30 = vpop.eup %609  ;;  %v277_v38 = vsel %vm238_vm0, %v266_v29, 2147483647  ;;  %v267_v41 = vsel %vm238_vm0, %v265_v28, 2147483647 }
  0x4a   : > { %294 = vst [vmem:[#allocation1] ss:$2 sm:$0xff] %v610_v30  ;;  %v278_v44 = vrot.slane %v277_v38, 4  ;;  %v268_v47 = vrot.slane %v267_v41, 4 }
  0x4c   : > { %vm279_vm4 = vcmp.lt.s32.totalorder %v277_v38, %v278_v44  ;;  %vm269_vm5 = vcmp.lt.s32.totalorder %v267_v41, %v268_v47 }
  0x4d   : > { %v280_v60 = vsel %vm279_vm4, %v277_v38, %v278_v44  ;;  %v270_v1 = vsel %vm269_vm5, %v267_v41, %v268_v47 }
  0x4e   : > { %v281_v2 = vrot.slane %v280_v60, 2  ;;  %v271_v5 = vrot.slane %v270_v1, 2 }
  0x50   : > { %vm282_vm6 = vcmp.lt.s32.totalorder %v280_v60, %v281_v2  ;;  %vm272_vm7 = vcmp.lt.s32.totalorder %v270_v1, %v271_v5 }
  0x51   : > { %v295_v32 = vld.sshfl [vmem:[#allocation1] sm:$0xff pattern:$0x75316420]  ;;  %v296_v33 = vld.sshfl [vmem:[#allocation1 + $0x8] sm:$0xff pattern:$0x75316420]  ;;  %v283_v15 = vsel %vm282_vm6, %v280_v60, %v281_v2  ;;  %v273_v18 = vsel %vm272_vm7, %v270_v1, %v271_v5 }
  0x52   : > { %v299_v35 = vsel %vm238_vm0, %v295_v32, 0.0  ;;  %v306_v36 = vsel %vm238_vm0, %v296_v33, 0.0  ;;  %318 = vst [vmem:[#allocation1] ss:$2 sm:$0xff] %v290_v25  ;;  %v284_v20 = vrot.slane %v283_v15, 1  ;;  %v274_v23 = vrot.slane %v273_v18, 1 }
  0x53   : > { %v300_v39 = vrot.slane %v299_v35, 4  ;;  %v307_v40 = vrot.slane %v306_v36, 4 }
  0x54   : > { %vm285_vm8 = vcmp.lt.s32.totalorder %v283_v15, %v284_v20  ;;  %vm275_vm10 = vcmp.lt.s32.totalorder %v273_v18, %v274_v23 }
  0x55   : > { %v301_v42 = vadd.f32 %v300_v39, %v299_v35  ;;  %v308_v43 = vadd.f32 %v307_v40, %v306_v36  ;;  %v286_v25 = vsel %vm285_vm8, %v283_v15, %v284_v20  ;;  %v276_v30 = vsel %vm275_vm10, %v273_v18, %v274_v23 }
  0x56   : > { %v288_v33 = vcvt.s32.f32 %v286_v25  ;;  %v371_v35 = vperm.slane %v289_v24, 1  ;;  %v287_v38 = vcvt.s32.f32 %v276_v30  ;;  %v370_v39 = vperm.slane %v289_v24, 0 }
  0x57   : > { %v302_v45 = vrot.slane %v301_v42, 2  ;;  %v309_v46 = vrot.slane %v308_v43, 2 }
  0x58   : > { %v374_v44 = vmul.f32 %v370_v39, %v287_v38 }
  0x59   : > { %v303_v48 = vadd.f32 %v302_v45, %v301_v42  ;;  %v310_v49 = vadd.f32 %v309_v46, %v308_v43  ;;  %v320_v50 = vld.sshfl [vmem:[#allocation1 + $0x8] sm:$0xff pattern:$0x75316420]  ;;  %v319_v51 = vld.sshfl [vmem:[#allocation1] sm:$0xff pattern:$0x75316420]  ;;  %v375_v42 = vmul.f32 %v371_v35, %v288_v33 }
  0x5a   : > { %v323_v52 = vsel %vm315_vm2, %v319_v51, 0.0  ;;  %v324_v53 = vsel %vm316_vm3, %v320_v50, 0.0  ;;  %v381_v50 = vsel %vm357_vm11, %v374_v44, %v370_v39 }
  0x5b   : > { %v304_v54 = vrot.slane %v303_v48, 1  ;;  %v311_v55 = vrot.slane %v310_v49, 1  ;;  %v325_v56 = vsel %vm238_vm0, %v323_v52, 0.0  ;;  %v332_v57 = vsel %vm238_vm0, %v324_v53, 0.0 }
  0x5c   : > { %v326_v58 = vrot.slane %v325_v56, 4  ;;  %v333_v59 = vrot.slane %v332_v57, 4  ;;  %v382_v47 = vsel %vm357_vm11, %v375_v42, %v371_v35  ;;  %v384_v53 = vsel %vm383_vm12, %v381_v50, %v287_v38 }
  0x5d   : > { %v305_v61 = vadd.f32 %v304_v54, %v303_v48  ;;  %v312_v62 = vadd.f32 %v311_v55, %v310_v49  ;;  %v385_v51 = vsel %vm383_vm12, %v382_v47, %v288_v33 }
  0x5e   : > { %v327_v63 = vadd.f32 %v326_v58, %v325_v56  ;;  %v334_v0 = vadd.f32 %v333_v59, %v332_v57 }
  0x5f   : > { %611 = vlog2.f32 %v312_v62 }
  0x60   : > { %v328_v3 = vrot.slane %v327_v63, 2  ;;  %v335_v4 = vrot.slane %v334_v0, 2  ;;  %613 = vlog2.f32 %v305_v61 }
  0x62   : > { %v329_v6 = vadd.f32 %v328_v3, %v327_v63  ;;  %v336_v7 = vadd.f32 %v335_v4, %v334_v0 }
  0x64   : > { %v330_v8 = vrot.slane %v329_v6, 1  ;;  %v337_v9 = vrot.slane %v336_v7, 1 }
  0x65   : > { %v612_v10 = vpop.eup %611 }
  0x66   : > { %v614_v11 = vpop.eup %613  ;;  %v331_v12 = vadd.f32 %v330_v8, %v329_v6  ;;  %v338_v13 = vadd.f32 %v337_v9, %v336_v7  ;;  %v342_v14 = vmul.f32 0.6931472, %v612_v10 }
  0x67   : > { %v340_v16 = vmul.f32 0.6931472, %v614_v11 }
  0x68   : > { %v344_v17 = vsub.f32 %v338_v13, %v342_v14 }
  0x69   : > { %v343_v19 = vsub.f32 %v331_v12, %v340_v16 }
  0x6a   : > { %v347_v21 = vmul.f32 1.442695, %v344_v17  ;;  %v364_v41 = vrot.slane %v344_v17, 7 }
  0x6b   : > { %v345_v22 = vmul.f32 1.442695, %v343_v19 }
  0x6c   : > { %615 = vpow2.f32 %v347_v21  ;;  %v365_v45 = vsel %vm357_vm11, %v343_v19, %v364_v41 }
  0x6d   : > { %617 = vpow2.f32 %v345_v22 }
  0x72   : > { %v616_v28 = vpop.eup %615 }
  0x73   : > { %v618_v29 = vpop.eup %617  ;;  %v352_v32 = vsub.f32 1.0, %v616_v28 }
  0x74   : > { %v351_v36 = vsub.f32 1.0, %v618_v29 }
  0x75   : > { %v356_v37 = vrot.slane %v352_v32, 7 }
  0x77   : > { %v358_v40 = vsel %vm357_vm11, %v351_v36, %v356_v37 }
  0x78   : > { %v360_v31 = vmul.f32 %v358_v40, %v353_v34 }
  0x7a   : > { %v361_v43 = vmul.f32 %v360_v31, %v358_v40 }
  0x7c   : > { %v367_v46 = vmul.f32 %v365_v45, %v361_v43 }
  0x7e   : > { %v377_v48 = vperm.slane %v367_v46, 0  ;;  %v378_v49 = vperm.slane %v367_v46, 1 }
  0x80   : > { %v388_v52 = vsel %vm386_vm13, %v385_v51, %v378_v49  ;;  %v387_v55 = vsel %vm386_vm13, %v384_v53, %v377_v48 }
  0x81   : > { %v391_v54 = vrot.slane %v388_v52, 4 }
  0x83   : > { %v392_v56 = vsel %vm238_vm0, %v387_v55, %v391_v54 }
  0x84   : > { %395 = vst [vmem:[%s220_s12] sm:$0xff] %v392_v56 }
  0x85   : > { %706 = shalt.err (!%p703_p13)
}
  0x86   : > { %543 = dma.vmem_to_hbm [thread:$0]  (%p835_p9), %s411_s16, 128, %s413_s18, %s397_s20  }
  0x87 PF: > { %s424_s29 = sand.u32 1, %s745_s9   ;;  %p553_p0 = pnand %p522_p12, %p842_p11 }
  0x88   : > { %s425_s25 = scalar_lea.sflag [#allocation4], %s424_s29 }
  0x89   : > { %p554_p1 = pneg %p553_p0 }
  0x8b   : > { %740 = dma.done.wait (%p554_p1), %s425_s25, 128  }
  0x8c   : > { %742 = vsyncadd (%p554_p1), %s425_s25, 4294967168  ;;  %s21_s14 = sadd.s32 1, %s765_s14   ;;  %s957_s9 = smov %s749_s10 }
  0x8d   : > { %p18_p2 = scmp.ge.s32.totalorder %s21_s14, 4   ;;  %s958_s10 = smov %s753_s11 }
  0x8e   : > { %s959_s11 = smov %s840_s23  ;;  %s960_s12 = smov %s761_s13 }
  0x8f   : > { %s961_s13 = smov %s963_s17  ;;  %20 = sbr.rel (!%p18_p2) target bundleno = 8 (0x8), region = 90 }
  0x94   :  { %431 = vsyncpa [#allocation3], 1 }
  0x95   :  { %433 = vsyncpa [#allocation3 + $0x1], 1 }
  0x96   :  { %434 = vsyncpa [#allocation6], 1 }
  0x97   :  { %436 = vsyncpa [#allocation6 + $0x1], 1 }
  0x98   :  { %437 = vsyncpa [#allocation4], 1 }
  0x99   :  { %439 = vsyncpa [#allocation4 + $0x1], 1 }

</bundles_post_ra>
